<compile_context>
chip_gen: v7x
topology: tpu7x:2x2x1
jax: 0.10.0
libtpu: 0.0.40
codegen_flags: <defaults>
</compile_context>

<pallas_src>
import jax
import jax.numpy as jnp
from jax.experimental import pallas as pl
from jax.experimental.pallas import tpu as pltpu


def _round_up(v, m):
    return ((v + m - 1) // m) * m


def _linear_lane_kernel(x_ref, w_ref, b_ref, o_ref):
    """y[0, n] = sum_d w[d] * x[d, n] + b, with batch n on the lane axis.

    x_ref: [D, TN] VMEM tile (features on sublanes, batch on lanes)
    w_ref: [D]     SMEM scalars
    b_ref: [1]     SMEM scalar
    o_ref: [1, TN] lane-dense output tile
    """
    d_features = x_ref.shape[0]
    # Unrolled scalar x vector FMAs on the VPU; in-kernel upcast to f32.
    acc = w_ref[0] * x_ref[0:1, :].astype(jnp.float32)
    for d in range(1, d_features):
        acc = acc + w_ref[d] * x_ref[d:d + 1, :].astype(jnp.float32)
    o_ref[...] = acc + b_ref[0]


def multi_linear_regression(x, weight, bias, *, target_step_bytes=4 << 20,
                            vmem_limit_bytes=48 << 20):
    """Forward of nn.Linear(input_dim, 1): y = x @ W^T + b for x of shape [N, D]."""
    N, D = x.shape
    O = weight.shape[0]
    assert O == 1, "MultiLinearRegressionModel uses nn.Linear(input_dim, 1)"
    assert weight.shape == (O, D)

    # One-time layout plumbing outside the streaming pass: batch on lanes.
    xT = x.T                                       # [D, N], native dtype (no f32 copy of x)
    w = weight.reshape(D).astype(jnp.float32)      # tiny -> SMEM scalars
    b = bias.reshape(1).astype(jnp.float32)

    itemsize = jnp.dtype(x.dtype).itemsize
    n_pad = _round_up(N, 128)

    # Lane-tile size: big enough to amortize per-step pipeline overhead
    # (~0.35 us/step), capped so the double-buffered, sublane-padded working
    # set (2x x-tile + 2x out-tile) stays under ~40 MiB (fits v7x's 64 MiB).
    tn = _round_up(max(128, target_step_bytes // max(D * itemsize, 1)), 128)
    sub_pad = _round_up(D, 8)
    per_lane_vmem = 2 * sub_pad * itemsize + 2 * 8 * 4
    tn_cap = max(128, ((40 << 20) // per_lane_vmem) // 128 * 128)
    tn = min(tn, tn_cap, n_pad)

    # Keep >= 2 grid steps when the batch allows it so the "parallel" axis can
    # actually be split across v7x's two TensorCores.
    if tn >= n_pad and n_pad >= 256:
        tn = _round_up(pl.cdiv(N, 2), 128)

    grid = (pl.cdiv(N, tn),)

    out_row = pl.pallas_call(
        _linear_lane_kernel,
        out_shape=jax.ShapeDtypeStruct((1, N), jnp.float32),
        grid=grid,
        in_specs=[
            pl.BlockSpec((D, tn), lambda i: (0, i)),            # streamed x tile
            pl.BlockSpec(memory_space=pltpu.MemorySpace.SMEM),  # weight scalars
            pl.BlockSpec(memory_space=pltpu.MemorySpace.SMEM),  # bias scalar
        ],
        out_specs=pl.BlockSpec((1, tn), lambda i: (0, i)),      # lane-dense output
        compiler_params=pltpu.CompilerParams(
            dimension_semantics=("parallel",),                  # v7x 2-TC split
            vmem_limit_bytes=vmem_limit_bytes,
        ),
    )(xT, w, b)

    return out_row.reshape(N, O)


if __name__ == "__main__":
    # ex1data2.txt has 2 feature columns -> input_dim = 2, out_features = 1.
    input_dim, out_features = 2, 1
    key = jax.random.PRNGKey(0)
    k_x, k_w, k_b, k_x2 = jax.random.split(key, 4)

    # PyTorch-style nn.Linear init (uniform +-1/sqrt(fan_in)).
    bound = 1.0 / jnp.sqrt(jnp.float32(input_dim))
    weight = jax.random.uniform(
        k_w, (out_features, input_dim), minval=-bound, maxval=bound, dtype=jnp.float32
    )
    bias = jax.random.uniform(
        k_b, (out_features,), minval=-bound, maxval=bound, dtype=jnp.float32
    )

    # Small batch: single grid step, ragged lane block (masked writeback).
    N = 8
    x = jax.random.normal(k_x, (N, input_dim), dtype=jnp.float32)
    y = jax.block_until_ready(multi_linear_regression(x, weight, bias))
    y_ref = x @ weight.T + bias
    assert y.shape == (N, out_features)
    assert jnp.allclose(y, y_ref, atol=1e-5, rtol=1e-5)

    # Larger batch: a tiny target_step_bytes forces a multi-step grid plus a
    # ragged last lane block (exercises the pipelined / masked-store paths).
    N2 = 1000
    x2 = jax.random.normal(k_x2, (N2, input_dim), dtype=jnp.float32)
    y2 = jax.block_until_ready(
        multi_linear_regression(x2, weight, bias, target_step_bytes=1024)
    )
    y2_ref = x2 @ weight.T + bias
    assert y2.shape == (N2, out_features)
    assert jnp.allclose(y2, y2_ref, atol=1e-5, rtol=1e-5)

    print("KERNEL_OK")
</pallas_src>

<mosaic_0001>
module attributes {stable_mosaic.version = 11 : i64} {
  func.func @_linear_lane_kernel(%arg0: i32, %arg1: memref<2x128xf32, #tpu.memory_space<vmem>>, %arg2: memref<2xf32, #tpu.memory_space<smem>>, %arg3: memref<1xf32, #tpu.memory_space<smem>>, %arg4: memref<1x128xf32, #tpu.memory_space<vmem>>) attributes {dimension_semantics = [#tpu.dimension_semantics<parallel>], iteration_bounds = array<i64: 1>, scalar_prefetch = 0 : i64, scratch_operands = 0 : i64, tpu.core_type = #tpu.core_type<tc>, window_params = [{transform_indices = @transform_0, window_bounds = array<i64: 2, 128>}, {transform_indices = @transform_1, window_bounds = array<i64: 2>}, {transform_indices = @transform_2, window_bounds = array<i64: 1>}, {transform_indices = @transform_3, window_bounds = array<i64: 1, 128>}]} {
    %c0 = arith.constant 0 : index
    %0 = memref.load %arg2[%c0] : memref<2xf32, #tpu.memory_space<smem>>
    %c0_0 = arith.constant 0 : index
    %c0_1 = arith.constant 0 : index
    %1 = vector.load %arg1[%c0_0, %c0_1] : memref<2x128xf32, #tpu.memory_space<vmem>>, vector<1x128xf32>
    %2 = vector.broadcast %0 : f32 to vector<1x128xf32>
    %3 = arith.mulf %2, %1 : vector<1x128xf32>
    %c1 = arith.constant 1 : index
    %4 = memref.load %arg2[%c1] : memref<2xf32, #tpu.memory_space<smem>>
    %c1_2 = arith.constant 1 : index
    %c0_3 = arith.constant 0 : index
    %5 = vector.load %arg1[%c1_2, %c0_3] : memref<2x128xf32, #tpu.memory_space<vmem>>, vector<1x128xf32>
    %6 = vector.broadcast %4 : f32 to vector<1x128xf32>
    %7 = arith.mulf %6, %5 : vector<1x128xf32>
    %8 = arith.addf %3, %7 : vector<1x128xf32>
    %c0_4 = arith.constant 0 : index
    %9 = memref.load %arg3[%c0_4] : memref<1xf32, #tpu.memory_space<smem>>
    %10 = vector.broadcast %9 : f32 to vector<1x128xf32>
    %11 = arith.addf %8, %10 : vector<1x128xf32>
    %c0_5 = arith.constant 0 : index
    %c0_6 = arith.constant 0 : index
    %12 = vector.load %arg4[%c0_5, %c0_6] : memref<1x128xf32, #tpu.memory_space<vmem>>, vector<1x128xf32>
    tpu.vector_store %arg4[%c0_5, %c0_6], %11 {strides = array<i32>} : memref<1x128xf32, #tpu.memory_space<vmem>>, vector<1x128xf32>,
    return
  }
  func.func @transform_0(%arg0: i32) -> (i32, i32) {
    %c0_i32 = arith.constant 0 : i32
    %c0_i32_0 = arith.constant 0 : i32
    return %c0_i32, %arg0 : i32, i32
  }
  func.func @transform_1(%arg0: i32) -> i32 {
    %c0_i32 = arith.constant 0 : i32
    %c0_i32_0 = arith.constant 0 : i32
    return %c0_i32 : i32
  }
  func.func @transform_2(%arg0: i32) -> i32 {
    %c0_i32 = arith.constant 0 : i32
    %c0_i32_0 = arith.constant 0 : i32
    return %c0_i32 : i32
  }
  func.func @transform_3(%arg0: i32) -> (i32, i32) {
    %c0_i32 = arith.constant 0 : i32
    %c0_i32_0 = arith.constant 0 : i32
    return %c0_i32, %arg0 : i32, i32
  }
}

</mosaic_0001>

<bundles_post_ra>
// kernel: tpu_custom_call.1
= control target key start
LH: loop header
LB: loop body
LE: loop exit
PB: predicated region body
PF: predicated region fallthrough
CT: control target
= control target key end

     0   :  { %9 = vsyncpa [#allocation5], 0  ;;  %s144_s0 = inlined_call_operand.vmem [shape: f32[2,8], index: 0, kind: input, shape index: {}]   ;;  %s145_s1 = inlined_call_operand.vmem [shape: f32[2], index: 1, kind: input, shape index: {}]   ;;  %s146_s2 = inlined_call_operand.<no memory space> [shape: f32[1], index: 2, kind: input, shape index: {}]   ;;  %s147_s3 = inlined_call_operand.hbm [shape: f32[1,8], index: 3, kind: output, shape index: {}]  }
   0x1   :  { %10 = vsyncpa [#allocation4], 0  ;;  %s19_s14 = sshll.u32 %s145_s1, 4  ;;  %s20_s14 = int_to_ptr.vmem [resolvable:$true] %s19_s14 }
   0x2   :  { %s60_s15 = scalar_lea.vmem %s20_s14, 16  ;;  %p65_p1 = scmp.lt.s32.totalorder %s20_s14, %s20_s14 }
   0x3   :  { %p61_p0 = scmp.ne.s32.totalorder %s20_s14, %s60_s15  ;;  %p66_p2 = scmp.lt.s32.totalorder %s60_s15, %s60_s15 }
   0x5   :  { %p67_p3 = por %p66_p2, %p65_p1 }
   0x7   :  { %p68_p4 = pnand %p67_p3, %p61_p0 }
   0x9   :  { %71 = shalt.err (!%p68_p4)
}
   0xa   :  { %s98_s16 = smov [#allocation3]  }
   0xb   :  { %22 = dma.vmem_to_smem %s20_s14, 16, %s98_s16, [#allocation5]  }
   0xc   :  { %94 = dma.done.wait [#allocation5], 16  }
   0xd   :  { %95 = vsyncadd [#allocation5], 4294967280 }
   0xe   :  { %28 = sfence }
   0xf   :  { %s29_s17 = sld [smem:[#allocation3]]  ;;  %s57_s18 = sld [smem:[#allocation3 + $0x1]]  ;;  %v30_v0 = vld [vmem:[%s144_s0] sm:$0x1]  ;;  %v34_v1 = vld [vmem:[%s144_s0 + $0x1] sm:$0x1]  ;;  %v39_v6 = vstv %s146_s2 }
  0x10   :  { %s99_s24 = smov [#allocation6]  }
  0x11   :  { %s48_s25 = sshll.u32 %s99_s24, 4  ;;  %s49_s25 = int_to_ptr.vmem [resolvable:$true] %s48_s25 }
  0x12   :  { %s72_s26 = scalar_lea.vmem %s49_s25, 16  ;;  %s76_s27 = scalar_lea.vmem %s49_s25, 32 }
  0x13   :  { %p73_p5 = scmp.ne.s32.totalorder %s49_s25, %s72_s26  ;;  %p77_p6 = scmp.lt.s32.totalorder %s49_s25, %s49_s25 }
  0x14   :  { %p78_p7 = scmp.lt.s32.totalorder %s76_s27, %s72_s26 }
  0x15   :  { %v31_v2 = vstv %s29_s17  ;;  %v35_v3 = vstv %s57_s18 }
  0x16   :  { %v32_v4 = vmul.f32 %v31_v2, %v30_v0  ;;  %v36_v5 = vmul.f32 %v35_v3, %v34_v1  ;;  %p79_p8 = por %p78_p7, %p77_p6 }
  0x18   :  { %v37_v7 = vadd.f32 %v36_v5, %v32_v4  ;;  %p80_p9 = pnand %p79_p8, %p73_p5 }
  0x1a   :  { %v40_v8 = vadd.f32 %v39_v6, %v37_v7 }
  0x1c   :  { %41 = vst [vmem:[#allocation6] sm:$0x1] %v40_v8 }
  0x1d   :  { %83 = shalt.err (!%p80_p9)
}
  0x1e   :  { %s84_s29 = scalar_lea.hbm %s147_s3, 16 }
  0x1f   :  { %p85_p10 = scmp.ne.s32.totalorder %s147_s3, %s84_s29  ;;  %p88_p11 = scmp.lt.u32.totalorder %s84_s29, %s147_s3 }
  0x21   :  { %p90_p12 = pnand %p88_p11, %p85_p10 }
  0x23   :  { %93 = shalt.err (!%p90_p12)
}
  0x24   :  { %51 = dma.vmem_to_hbm [thread:$0]  %s49_s25, 16, %s147_s3, [#allocation4]  }
  0x25   :  { %96 = dma.done.wait [#allocation4], 16  }
  0x26   :  { %97 = vsyncadd [#allocation4], 4294967280 }
  0x27   :  { %55 = vsyncpa [#allocation4], 1 }
  0x28   :  { %56 = vsyncpa [#allocation5], 1 }

</bundles_post_ra>
